<compile_context>
chip_gen: v6e
topology: v6e:2x2x1
jax: 0.10.0
libtpu: 0.0.40
codegen_flags: <defaults>
</compile_context>

<pallas_src>
import functools

import jax
import jax.numpy as jnp
from jax.experimental import pallas as pl
from jax.experimental.pallas import tpu as pltpu


def _global_attention_kernel(q_ref, mem_ref, w_ref, attn_h_ref, av_ref,
                             mem_bf_ref, memt_ref):
    # q_ref      : [1, T_TILE, D]  queries for this (batch, t-tile) block
    # mem_ref    : [1, S, D]       memory bank for this batch element
    # w_ref      : [2, D, D] bf16  packed [W_c ; W_q] slices of linear_out
    # attn_h_ref : [1, T_TILE, D]  output block in [B, T, D] layout
    # av_ref     : [1, T_TILE, S]  output block in [B, T, S] layout
    # mem_bf_ref : [S, D] bf16 scratch (hoisted cast,      filled at t == 0)
    # memt_ref   : [D, S] bf16 scratch (hoisted transpose, filled at t == 0)

    # The memory bank only depends on the batch grid index, so cast it to bf16
    # and transpose it for the scores matmul once per batch element instead of
    # once per t step.  The inner t axis is "arbitrary", so (b, t=0) always
    # runs before (b, t>0) on the core that owns batch element b.
    @pl.when(pl.program_id(1) == 0)
    def _():
        mem_bf = mem_ref[0].astype(jnp.bfloat16)         # [S, D]
        mem_bf_ref[...] = mem_bf
        memt_ref[...] = jnp.transpose(mem_bf, (1, 0))    # [D, S]

    q = q_ref[0].astype(jnp.bfloat16)                    # [T_TILE, D]

    # ---- score: dot attention on the MXU (bf16 operands, f32 accumulate) ----
    scores = jnp.dot(q, memt_ref[...],
                     preferred_element_type=jnp.float32)           # [T_TILE,S]

    # ---- align = exp(scores); align_vectors = softmax(align) ----------------
    # Faithful to the reference: softmax is applied to exp(scores).  exp is
    # monotonic, so max(align) == exp(max(scores)): reduce the already-live
    # scores array instead of introducing another [T,S] reduce input.
    m = jnp.exp(jnp.max(scores, axis=-1, keepdims=True))            # [T_TILE,1]
    e = jnp.exp(jnp.exp(scores) - m)                                # [T_TILE,S]
    denom = jnp.sum(e, axis=-1, keepdims=True)
    av = e / denom        # exact division: rows sum to 1 (parity with reference)

    # ---- context: bmm(align_vectors, memory_bank) -> [T_TILE, D] ------------
    c = jnp.dot(av.astype(jnp.bfloat16), mem_bf_ref[...],
                preferred_element_type=jnp.float32)

    # ---- output projection; c_dec == 0 (fresh module) so its W third drops --
    attn_h = jnp.tanh(
        jnp.dot(c.astype(jnp.bfloat16), w_ref[0],
                preferred_element_type=jnp.float32)
        + jnp.dot(q, w_ref[1], preferred_element_type=jnp.float32))

    # ---- lane/sublane-dense stores in [B, T, *] layout -----------------------
    attn_h_ref[0] = attn_h.astype(attn_h_ref.dtype)
    av_ref[0] = av.astype(av_ref.dtype)


def _vmem_cap_bytes():
    """~3/4 of this chip's VMEM (v5e/v6e: 128 MiB, v7x: 64 MiB per core)."""
    try:
        info = pltpu.get_tpu_info()
        cap = (getattr(info, "vmem_capacity_bytes", None)
               or getattr(info, "vmem_bytes", None)
               or getattr(info, "vmem_size_bytes", None))
        if cap:
            return int(cap) * 3 // 4
    except Exception:
        pass
    # Conservative fallback that is safe on every generation (incl. v7x 64 MiB).
    return 48 * 1024 * 1024


def _vmem_bytes_estimate(t_tile, src_len, dim, itemsize):
    """Rough VMEM footprint for one (batch, t) grid step."""
    f32, bf16 = 4, 2
    mem_in = 2 * src_len * dim * itemsize       # memory-bank block (double-buf)
    q_in = 2 * t_tile * dim * itemsize          # query block (double-buf)
    h_out = 2 * t_tile * dim * itemsize         # attn_h out block (double-buf)
    av_out = 2 * t_tile * src_len * itemsize    # align out block (double-buf)
    weights = 2 * dim * dim * bf16              # single-buffered resident W
    mem_scr = src_len * dim * bf16 + dim * src_len * bf16   # bf16 scratches
    temps = 4 * t_tile * src_len * f32 + 2 * t_tile * dim * f32  # softmax/c
    return mem_in + q_in + h_out + av_out + weights + mem_scr + temps


def _pick_t_tile(t_pad, src_len, dim, itemsize, vmem_cap):
    # Cap at 128 (fills the v5e MXU M dimension; larger mostly costs VMEM) and
    # pick the largest candidate that divides the padded tgt_len and fits the
    # per-generation VMEM budget.
    cands = [c for c in (128, 64, 32, 16, 8) if t_pad % c == 0] or [t_pad]
    for c in cands:
        if _vmem_bytes_estimate(c, src_len, dim, itemsize) <= vmem_cap:
            return c
    return cands[-1]


@functools.partial(jax.jit, static_argnames=("t_tile",))
def global_attention_forward(inp, memory_bank, w_out, *, t_tile=None):
    """Pallas implementation of GlobalAttention.forward (dot attention).

    Args:
      inp:         [batch, tgt_len, dim] or [batch, dim] (one-step) queries.
      memory_bank: [batch, src_len, dim] source vectors.
      w_out:       [dim, 3*dim] linear_out weight (PyTorch [out, in] layout).
      t_tile:      optional tgt tile size (must divide the padded tgt_len).

    Returns:
      attn_h        [tgt_len, batch, dim]     (or [batch, dim] if one-step)
      align_vectors [tgt_len, batch, src_len] (or [batch, src_len] if one-step)
    """
    one_step = inp.ndim == 2
    if one_step:
        inp = inp[:, None, :]

    batch, src_len, dim = memory_bank.shape
    _, tgt_len, _ = inp.shape

    # Pad tgt_len to a multiple of 8 (sublane granularity).  Padded query rows
    # produce finite (uniform-softmax) outputs that are sliced away below.
    t_pad = -(-tgt_len // 8) * 8
    if t_pad != tgt_len:
        inp_p = jnp.pad(inp, ((0, 0), (0, t_pad - tgt_len), (0, 0)))
    else:
        inp_p = inp

    itemsize = jnp.dtype(inp.dtype).itemsize
    vmem_cap = _vmem_cap_bytes()
    if t_tile is None:
        t_tile = _pick_t_tile(t_pad, src_len, dim, itemsize, vmem_cap)
    assert t_pad % t_tile == 0, "t_tile must divide the (padded) tgt_len"
    n_t = t_pad // t_tile

    # Only the [c ; input] two-thirds of linear_out contribute (c_dec == 0 for
    # a fresh module); pre-transpose so the kernel does x @ W^T as x @ wt, pack
    # both slices into one grid-invariant array and cast to bf16 for the MXU.
    wc = w_out[:, :dim].T                 # [dim, dim]
    wq = w_out[:, dim:2 * dim].T          # [dim, dim]
    w_packed = jnp.stack([wc, wq]).astype(jnp.bfloat16)   # [2, dim, dim]

    attn_h_bt, av_bt = pl.pallas_call(
        _global_attention_kernel,
        out_shape=(
            jax.ShapeDtypeStruct((batch, t_pad, dim), inp.dtype),
            jax.ShapeDtypeStruct((batch, t_pad, src_len), inp.dtype),
        ),
        grid_spec=pltpu.PrefetchScalarGridSpec(
            num_scalar_prefetch=0,
            # batch outer, t-tile inner: the memory-bank block (depends only
            # on b) and the t==0 scratches stay valid across the inner t steps.
            grid=(batch, n_t),
            in_specs=[
                pl.BlockSpec((1, t_tile, dim), lambda b, t: (b, t, 0)),
                pl.BlockSpec((1, src_len, dim), lambda b, t: (b, 0, 0)),
                # Grid-invariant weights: whole array resident in VMEM,
                # single-buffered (no pointless double-buffer DMA).
                pl.BlockSpec(memory_space=pltpu.MemorySpace.VMEM),
            ],
            out_specs=[
                pl.BlockSpec((1, t_tile, dim), lambda b, t: (b, t, 0)),
                pl.BlockSpec((1, t_tile, src_len), lambda b, t: (b, t, 0)),
            ],
            scratch_shapes=[
                pltpu.VMEM((src_len, dim), jnp.bfloat16),   # mem in bf16
                pltpu.VMEM((dim, src_len), jnp.bfloat16),   # mem^T in bf16
            ],
        ),
        compiler_params=pltpu.CompilerParams(
            # t must be "arbitrary": the pl.when(t == 0) scratch fill is a
            # carried dependency along t.  batch stays "parallel" so the v7x
            # megacore can split work across TensorCores when batch >= 2.
            dimension_semantics=("parallel", "arbitrary"),
            vmem_limit_bytes=vmem_cap),
    )(inp_p, memory_bank, w_packed)

    if one_step:
        # [B, t_pad, ...] -> [B, ...], matching the PyTorch squeeze(1) path.
        return attn_h_bt[:, 0, :], av_bt[:, 0, :]
    # Kernel emits lane/sublane-dense [B, T, *]; do the cheap leading-dim
    # transpose to the PyTorch [T, B, *] layout here in the wrapper.
    attn_h = jnp.transpose(attn_h_bt[:, :tgt_len], (1, 0, 2))
    av = jnp.transpose(av_bt[:, :tgt_len], (1, 0, 2))
    return attn_h, av


def _reference_forward(inp, memory_bank, w_out):
    """Pure-JAX reference mirroring the PyTorch module (dot, fresh state)."""
    one_step = inp.ndim == 2
    if one_step:
        inp = inp[:, None, :]
    hp = jax.lax.Precision.HIGHEST
    scores = jnp.einsum("btd,bsd->bts", inp, memory_bank, precision=hp)
    align = jnp.exp(scores)
    av = jax.nn.softmax(align, axis=-1)
    c = jnp.einsum("bts,bsd->btd", av, memory_bank, precision=hp)
    c_dec = jnp.zeros_like(inp)
    concat = jnp.concatenate([c, inp, c_dec], axis=-1)
    attn_h = jnp.tanh(jnp.einsum("btk,dk->btd", concat, w_out, precision=hp))
    if one_step:
        return attn_h[:, 0, :], av[:, 0, :]
    return jnp.transpose(attn_h, (1, 0, 2)), jnp.transpose(av, (1, 0, 2))


def _check(got, want, atol=1e-2, rtol=1e-2):
    # Tolerance accounts for bf16 MXU operands (f32 accumulation) in the
    # kernel vs. the full-f32 reference; observed error is O(1e-3).
    assert got.shape == want.shape, (got.shape, want.shape)
    assert jnp.allclose(got, want, atol=atol, rtol=rtol), (
        float(jnp.max(jnp.abs(got - want))))


if __name__ == "__main__":
    key = jax.random.PRNGKey(0)
    k_q, k_m, k_w, k_q2, k_m2, k_w2 = jax.random.split(key, 6)

    # ---- test 1: small shapes, tgt_len not a multiple of 8 (padding path) ---
    batch, src_len, tgt_len, dim = 2, 8, 4, 32
    inp = 0.25 * jax.random.normal(k_q, (batch, tgt_len, dim), jnp.float32)
    memory_bank = 0.25 * jax.random.normal(k_m, (batch, src_len, dim),
                                           jnp.float32)
    # linear_out = nn.Linear(dim * 3, dim, bias=False) for attn_type='dot'
    w_out = (jax.random.normal(k_w, (dim, 3 * dim), jnp.float32)
             * (1.0 / jnp.sqrt(3.0 * dim)))

    attn_h, av = global_attention_forward(inp, memory_bank, w_out)
    attn_h = jax.block_until_ready(attn_h)
    av = jax.block_until_ready(av)
    ref_h, ref_av = _reference_forward(inp, memory_bank, w_out)
    assert attn_h.shape == (tgt_len, batch, dim)
    assert av.shape == (tgt_len, batch, src_len)
    _check(attn_h, ref_h)
    _check(av, ref_av)

    # ---- test 2: larger shapes exercising tgt tiling (2 t-tiles, t==0 hoist) -
    b2, s2, t2, d2 = 2, 128, 16, 128
    inp2 = 0.1 * jax.random.normal(k_q2, (b2, t2, d2), jnp.float32)
    mem2 = 0.1 * jax.random.normal(k_m2, (b2, s2, d2), jnp.float32)
    w2 = (jax.random.normal(k_w2, (d2, 3 * d2), jnp.float32)
          * (1.0 / jnp.sqrt(3.0 * d2)))
    h2, a2 = global_attention_forward(inp2, mem2, w2, t_tile=8)
    h2 = jax.block_until_ready(h2)
    a2 = jax.block_until_ready(a2)
    rh2, ra2 = _reference_forward(inp2, mem2, w2)
    _check(h2, rh2)
    _check(a2, ra2)

    # ---- test 3: one-step decode path (2-D input) ---------------------------
    inp1 = inp[:, 0, :]
    h1, a1 = global_attention_forward(inp1, memory_bank, w_out)
    h1 = jax.block_until_ready(h1)
    a1 = jax.block_until_ready(a1)
    rh1, ra1 = _reference_forward(inp1, memory_bank, w_out)
    assert h1.shape == (batch, dim)
    assert a1.shape == (batch, src_len)
    _check(h1, rh1)
    _check(a1, ra1)

    print("KERNEL_OK")
</pallas_src>

<mosaic_0001>
module attributes {stable_mosaic.version = 11 : i64} {
  func.func @_global_attention_kernel(%arg0: i32, %arg1: i32, %arg2: memref<1x8x32xf32, #tpu.memory_space<vmem>>, %arg3: memref<1x8x32xf32, #tpu.memory_space<vmem>>, %arg4: memref<2x32x32xbf16, #tpu.memory_space<vmem>>, %arg5: memref<1x8x32xf32, #tpu.memory_space<vmem>>, %arg6: memref<1x8x8xf32, #tpu.memory_space<vmem>>, %arg7: memref<8x32xbf16, #tpu.memory_space<vmem>>, %arg8: memref<32x8xbf16, #tpu.memory_space<vmem>>) attributes {dimension_semantics = [#tpu.dimension_semantics<parallel>, #tpu.dimension_semantics<arbitrary>], iteration_bounds = array<i64: 2, 1>, scalar_prefetch = 0 : i64, scratch_operands = 2 : i64, tpu.core_type = #tpu.core_type<tc>, window_params = [{transform_indices = @transform_0, window_bounds = array<i64: 1, 8, 32>}, {transform_indices = @transform_1, window_bounds = array<i64: 1, 8, 32>}, {pipeline_mode = #tpu.pipeline_mode<synchronous>, transform_indices = @transform_2, window_bounds = array<i64: 2, 32, 32>}, {transform_indices = @transform_3, window_bounds = array<i64: 1, 8, 32>}, {transform_indices = @transform_4, window_bounds = array<i64: 1, 8, 8>}]} {
    %c0_i32 = arith.constant 0 : i32
    %0 = arith.cmpi eq, %arg1, %c0_i32 : i32
    %1 = arith.extui %0 : i1 to i32
    %c0_i32_0 = arith.constant 0 : i32
    %2 = arith.cmpi ne, %1, %c0_i32_0 : i32
    scf.if %2 {
      %c0_23 = arith.constant 0 : index
      %c0_24 = arith.constant 0 : index
      %c0_25 = arith.constant 0 : index
      %37 = vector.load %arg3[%c0_23, %c0_24, %c0_25] : memref<1x8x32xf32, #tpu.memory_space<vmem>>, vector<1x8x32xf32>
      %38 = vector.shape_cast %37 : vector<1x8x32xf32> to vector<8x32xf32>
      %39 = arith.truncf %38 : vector<8x32xf32> to vector<8x32xbf16>
      %c0_26 = arith.constant 0 : index
      %c0_27 = arith.constant 0 : index
      %40 = vector.load %arg7[%c0_26, %c0_27] : memref<8x32xbf16, #tpu.memory_space<vmem>>, vector<8x32xbf16>
      tpu.vector_store %arg7[%c0_26, %c0_27], %39 {strides = array<i32>} : memref<8x32xbf16, #tpu.memory_space<vmem>>, vector<8x32xbf16>,
      %41 = tpu.transpose %39, [1, 0] : vector<8x32xbf16> -> vector<32x8xbf16>
      %c0_28 = arith.constant 0 : index
      %c0_29 = arith.constant 0 : index
      %42 = vector.load %arg8[%c0_28, %c0_29] : memref<32x8xbf16, #tpu.memory_space<vmem>>, vector<32x8xbf16>
      tpu.vector_store %arg8[%c0_28, %c0_29], %41 {strides = array<i32>} : memref<32x8xbf16, #tpu.memory_space<vmem>>, vector<32x8xbf16>,
    } else {
    }
    %c0 = arith.constant 0 : index
    %c0_1 = arith.constant 0 : index
    %c0_2 = arith.constant 0 : index
    %3 = vector.load %arg2[%c0, %c0_1, %c0_2] : memref<1x8x32xf32, #tpu.memory_space<vmem>>, vector<1x8x32xf32>
    %4 = vector.shape_cast %3 : vector<1x8x32xf32> to vector<8x32xf32>
    %5 = arith.truncf %4 : vector<8x32xf32> to vector<8x32xbf16>
    %c0_3 = arith.constant 0 : index
    %c0_4 = arith.constant 0 : index
    %6 = vector.load %arg8[%c0_3, %c0_4] : memref<32x8xbf16, #tpu.memory_space<vmem>>, vector<32x8xbf16>
    %cst = arith.constant dense<0.000000e+00> : vector<8x8xf32>
    %7 = tpu.matmul %5, %6, %cst {dimension_numbers = #tpu.dot_dimension_numbers<[1], [0], [0], [1], [0, 0, 1, 1], [], []>} : vector<8x32xbf16>, vector<32x8xbf16>, vector<8x8xf32> -> vector<8x8xf32>
    %cst_5 = arith.constant dense<0xFF800000> : vector<8xf32>
    %8 = vector.multi_reduction <maximumf>, %7, %cst_5 [1] : vector<8x8xf32> to vector<8xf32>
    %9 = vector.shape_cast %8 : vector<8xf32> to vector<8x1xf32>
    %10 = math.exp %9 : vector<8x1xf32>
    %11 = math.exp %7 : vector<8x8xf32>
    %12 = vector.broadcast %10 : vector<8x1xf32> to vector<8x8xf32>
    %13 = arith.subf %11, %12 : vector<8x8xf32>
    %14 = math.exp %13 : vector<8x8xf32>
    %cst_6 = arith.constant dense<0.000000e+00> : vector<8xf32>
    %15 = vector.multi_reduction <add>, %14, %cst_6 [1] : vector<8x8xf32> to vector<8xf32>
    %16 = vector.shape_cast %15 : vector<8xf32> to vector<8x1xf32>
    %17 = vector.broadcast %16 : vector<8x1xf32> to vector<8x8xf32>
    %18 = arith.divf %14, %17 : vector<8x8xf32>
    %19 = arith.truncf %18 : vector<8x8xf32> to vector<8x8xbf16>
    %c0_7 = arith.constant 0 : index
    %c0_8 = arith.constant 0 : index
    %20 = vector.load %arg7[%c0_7, %c0_8] : memref<8x32xbf16, #tpu.memory_space<vmem>>, vector<8x32xbf16>
    %cst_9 = arith.constant dense<0.000000e+00> : vector<8x32xf32>
    %21 = tpu.matmul %19, %20, %cst_9 {dimension_numbers = #tpu.dot_dimension_numbers<[1], [0], [0], [1], [0, 0, 1, 1], [], []>} : vector<8x8xbf16>, vector<8x32xbf16>, vector<8x32xf32> -> vector<8x32xf32>
    %22 = arith.truncf %21 : vector<8x32xf32> to vector<8x32xbf16>
    %c0_10 = arith.constant 0 : index
    %c0_11 = arith.constant 0 : index
    %c0_12 = arith.constant 0 : index
    %23 = vector.load %arg4[%c0_10, %c0_11, %c0_12] : memref<2x32x32xbf16, #tpu.memory_space<vmem>>, vector<1x32x32xbf16>
    %24 = vector.shape_cast %23 : vector<1x32x32xbf16> to vector<32x32xbf16>
    %cst_13 = arith.constant dense<0.000000e+00> : vector<8x32xf32>
    %25 = tpu.matmul %22, %24, %cst_13 {dimension_numbers = #tpu.dot_dimension_numbers<[1], [0], [0], [1], [0, 0, 1, 1], [], []>} : vector<8x32xbf16>, vector<32x32xbf16>, vector<8x32xf32> -> vector<8x32xf32>
    %c1 = arith.constant 1 : index
    %c0_14 = arith.constant 0 : index
    %c0_15 = arith.constant 0 : index
    %26 = vector.load %arg4[%c1, %c0_14, %c0_15] : memref<2x32x32xbf16, #tpu.memory_space<vmem>>, vector<1x32x32xbf16>
    %27 = vector.shape_cast %26 : vector<1x32x32xbf16> to vector<32x32xbf16>
    %cst_16 = arith.constant dense<0.000000e+00> : vector<8x32xf32>
    %28 = tpu.matmul %5, %27, %cst_16 {dimension_numbers = #tpu.dot_dimension_numbers<[1], [0], [0], [1], [0, 0, 1, 1], [], []>} : vector<8x32xbf16>, vector<32x32xbf16>, vector<8x32xf32> -> vector<8x32xf32>
    %29 = arith.addf %25, %28 : vector<8x32xf32>
    %30 = math.tanh %29 : vector<8x32xf32>
    %c0_17 = arith.constant 0 : index
    %c0_18 = arith.constant 0 : index
    %c0_19 = arith.constant 0 : index
    %31 = vector.load %arg5[%c0_17, %c0_18, %c0_19] : memref<1x8x32xf32, #tpu.memory_space<vmem>>, vector<1x8x32xf32>
    %32 = vector.shape_cast %31 : vector<1x8x32xf32> to vector<8x32xf32>
    %33 = vector.shape_cast %30 : vector<8x32xf32> to vector<1x8x32xf32>
    tpu.vector_store %arg5[%c0_17, %c0_18, %c0_19], %33 {strides = array<i32>} : memref<1x8x32xf32, #tpu.memory_space<vmem>>, vector<1x8x32xf32>,
    %c0_20 = arith.constant 0 : index
    %c0_21 = arith.constant 0 : index
    %c0_22 = arith.constant 0 : index
    %34 = vector.load %arg6[%c0_20, %c0_21, %c0_22] : memref<1x8x8xf32, #tpu.memory_space<vmem>>, vector<1x8x8xf32>
    %35 = vector.shape_cast %34 : vector<1x8x8xf32> to vector<8x8xf32>
    %36 = vector.shape_cast %18 : vector<8x8xf32> to vector<1x8x8xf32>
    tpu.vector_store %arg6[%c0_20, %c0_21, %c0_22], %36 {strides = array<i32>} : memref<1x8x8xf32, #tpu.memory_space<vmem>>, vector<1x8x8xf32>,
    return
  }
  func.func @transform_0(%arg0: i32, %arg1: i32) -> (i32, i32, i32) {
    %c0_i32 = arith.constant 0 : i32
    %c0_i32_0 = arith.constant 0 : i32
    return %arg0, %arg1, %c0_i32 : i32, i32, i32
  }
  func.func @transform_1(%arg0: i32, %arg1: i32) -> (i32, i32, i32) {
    %c0_i32 = arith.constant 0 : i32
    %c0_i32_0 = arith.constant 0 : i32
    %c0_i32_1 = arith.constant 0 : i32
    return %arg0, %c0_i32, %c0_i32_0 : i32, i32, i32
  }
  func.func @transform_2(%arg0: i32, %arg1: i32) -> (i32, i32, i32) {
    %c0_i32 = arith.constant 0 : i32
    %c0_i32_0 = arith.constant 0 : i32
    %c0_i32_1 = arith.constant 0 : i32
    %c0_i32_2 = arith.constant 0 : i32
    return %c0_i32, %c0_i32_0, %c0_i32_1 : i32, i32, i32
  }
  func.func @transform_3(%arg0: i32, %arg1: i32) -> (i32, i32, i32) {
    %c0_i32 = arith.constant 0 : i32
    %c0_i32_0 = arith.constant 0 : i32
    return %arg0, %arg1, %c0_i32 : i32, i32, i32
  }
  func.func @transform_4(%arg0: i32, %arg1: i32) -> (i32, i32, i32) {
    %c0_i32 = arith.constant 0 : i32
    %c0_i32_0 = arith.constant 0 : i32
    return %arg0, %arg1, %c0_i32 : i32, i32, i32
  }
}

</mosaic_0001>

<bundles_post_ra>
// kernel: global_attention_forward.1
= control target key start
LH: loop header
LB: loop body
LE: loop exit
PB: predicated region body
PF: predicated region fallthrough
CT: control target
= control target key end

     0   :  { %s842_s15 = smov 0   ;;  %s844_s16 = smov 0   ;;  %s922_s0 = inlined_call_operand.vmem [shape: f32[2,8,32], index: 0, kind: input, shape index: {}]   ;;  %s923_s1 = inlined_call_operand.vmem [shape: f32[2,8,32], index: 1, kind: input, shape index: {}]   ;;  %s924_s2 = inlined_call_operand.vmem [shape: bf16[2,32,32], index: 2, kind: input, shape index: {}]   ;;  %s925_s3 = inlined_call_operand.vmem [shape: f32[2,8,32], index: 3, kind: output, shape index: {0}]   ;;  %s926_s4 = inlined_call_operand.vmem [shape: f32[2,8,8], index: 4, kind: output, shape index: {1}]  }
   0x1   :  { %s846_s17 = smov 0  }
   0x2 LB: > { %s27_s18 = sadd.s32 1, %s809_s16  ;;  %p682_p0 = scmp.ge.s32.totalorder %s813_s17, 1  ;;  %s813_s17 = sphi %s846_s17, %s15_s17   ;;  %s809_s16 = sphi %s844_s16, %s928_s16   ;;  %s805_s15 = sphi %s842_s15, %s927_s15  }
   0x3   : > { %p29_p1 = scmp.ge.s32.totalorder %s27_s18, 2  ;;  %p194_p2 = scmp.lt.s32.totalorder %s813_s17, 3 }
   0x5   : > { %s930_s18 = smov (%p29_p1, %s27_s18), 0  ;;  %p195_p3 = pnand %p682_p0, %p194_p2 }
   0x6   : > { %p235_p4 = scmp.lt.s32.totalorder (!%p195_p3), %s805_s15, 1 }
   0x7   : > { %198 = sbr.rel (%p195_p3) target bundleno = 1066 (0x42a), region = 32 }
   0xc   : > { %v815_v0 = vmov 0.0   ;;  %s932_s15 = smov (!%p235_p4, %s805_s15), 1  ;;  %vm816_vm0 = vmmov 0   ;;  %vm267_vm1 = vcmask 257024   ;;  %vm299_vm2 = vcmask 60416   ;;  %v779_v29 = vld [vmem:[%s924_s2 + $0x8] sm:$0xff]  }
   0xd   : > { %718 = vmatprep.subr.bf16.mxu0 %v815_v0  ;;  %726 = vmatprep.subr.bf16.mxu1 %v815_v0  ;;  %s866_s19 = sshll.u32 %s932_s15, 3  ;;  %vm322_vm3 = vcmask 261120   ;;  %vm366_vm4 = vcmask 64512   ;;  %vm387_vm5 = vcmask 1043456   ;;  %v780_v30 = vld [vmem:[%s924_s2] sm:$0xff]   ;;  %v777_v34 = vld [vmem:[%s924_s2 + $0x18] sm:$0xff]  }
   0xe   : > { %722 = vmatprep.mubr.msk.bf16.mxu0 %vm816_vm0, %v815_v0  ;;  %728 = vmatprep.mubr.msk.bf16.mxu1 %vm816_vm0, %v815_v0  ;;  %s245_s22 = scalar_lea.vmem %s923_s1, %s866_s19  ;;  %s241_s25 = scalar_lea.vmem %s922_s0, %s866_s19  ;;  %v778_v36 = vld [vmem:[%s924_s2 + $0x10] sm:$0xff]  }
   0xf   : > { %v265_v1 = vld [vmem:[%s245_s22] sm:$0xff]  ;;  %s259_s6 = scalar_lea.vmem %s926_s4, %s866_s19  ;;  %s252_s13 = scalar_lea.vmem %s925_s3, %s866_s19 }
  0x10   : > { %v266_v2 = vpack.c.bf16 %v265_v1, %v265_v1  ;;  %v304_v10 = vld [vmem:[%s241_s25] sm:$0xff] }
  0x11   : > { %v305_v12 = vpack.c.bf16 %v304_v10, %v304_v10 }
  0x12   : > { %269 = vxpose.xlu0.c.b16.start.end [1/1] (short) (narrow) %v266_v2, 32  ;;  %268 = vst.msk [vmem:[#allocation2] sm:$0xf] %vm267_vm1, %v266_v2 }
  0x19   : > { %v383_v27 = vld [vmem:[#allocation2] sm:$0xf] }
  0x1a   : > { %v389_v28 = vsel %vm387_vm5, %v383_v27, 0 }
  0x1b   : > { %727 = vmatpush3.bf16.msra.mxu1 %v389_v28 }
  0x1c   : > { %732 = vmatprep.subr.bf16.mxu1 %v815_v0 }
  0x74   : > { %v277_v3 = vpop.trf.xlu0 }
  0x75   : > { %v687_v4 = vcombine.low %v277_v3, %v277_v3  ;;  %v688_v5 = vcombine.high %v277_v3, %v277_v3 }
  0x77   : > { %300 = vst.msk [vmem:[#allocation3] sm:$0xf] %vm299_vm2, %v687_v4  ;;  %301 = vst.msk [vmem:[#allocation3 + $0x4] sm:$0xf] %vm299_vm2, %v688_v5 }
  0x78   : > { %v278_v6 = vpop.trf.xlu0 }
  0x79   : > { %v689_v7 = vcombine.low %v278_v6, %v278_v6  ;;  %v690_v8 = vcombine.high %v278_v6, %v278_v6 }
  0x7b   : > { %302 = vst.msk [vmem:[#allocation3 + $0x8] sm:$0xf] %vm299_vm2, %v689_v7  ;;  %303 = vst.msk [vmem:[#allocation3 + $0xc] sm:$0xf] %vm299_vm2, %v690_v8 }
  0x7e   : > { %v776_v11 = vld [vmem:[#allocation3] sm:$0xff]  }
  0x82   : > { %v775_v9 = vld [vmem:[#allocation3 + $0x8] sm:$0xff]  }
  0x83   : > { %719 = vmatpush3.bf16.msra.mxu0 %v775_v9 }
  0x84   : > { %720 = vmatprep.subr.bf16.mxu0 %v815_v0 }
  0x87   : > { %721 = vmatpush3.bf16.msra.mxu0 %v776_v11 }
  0x88   : > { %740 = vmatprep.subr.bf16.mxu0 %v815_v0 }
  0x8a   : > { %723 = vmatmul.mubr.msk.bf16.vlgmr.msra.gmra.mxu0 %vm322_vm3, %v305_v12 }
  0x8b   : > { %744 = vmatprep.mubr.msk.bf16.mxu0 %vm816_vm0, %v815_v0  ;;  %741 = vmatpush3.bf16.msra.mxu0 %v779_v29 }
  0x8c   : > { %742 = vmatprep.subr.bf16.mxu0 %v815_v0 }
  0x8f   : > { %743 = vmatpush3.bf16.msra.mxu0 %v780_v30 }
 0x14a   : > { %v360_v13 = vpop.f32.mrf.mxu0 }
 0x14b   : > { %v367_v14 = vsel %vm366_vm4, %v360_v13, -inf  ;;  %v372_v18 = vmul.f32 1.442695, %v360_v13 }
 0x14c   : > { %368 = vmax.xlane.f32.xlu0 %v367_v14  ;;  %v724_v15 = vpop.f32.mrf.mxu0 }
 0x14d   : > { %781 = vpow2.f32 %v372_v18 }
 0x14e   : > { %v363_v16 = vpop.f32.mrf.mxu0 }
 0x150   : > { %v725_v17 = vpop.f32.mrf.mxu0 }
 0x15a   : > { %v782_v21 = vpop.eup %781 }
 0x1d5   : > { %v369_v19 = vpop.xlane.xlu0 %368 }
 0x1d6   : > { %v370_v20 = vmul.f32 1.442695, %v369_v19 }
 0x1d8   : > { %783 = vpow2.f32 %v370_v20 }
 0x1e5   : > { %v784_v22 = vpop.eup %783 }
 0x1e6   : > { %v374_v23 = vsub.f32 %v782_v21, %v784_v22 }
 0x1e8   : > { %v375_v24 = vmul.f32 1.442695, %v374_v23 }
 0x1ea   : > { %785 = vpow2.f32 %v375_v24 }
 0x1f7   : > { %v786_v25 = vpop.eup %785 }
 0x1f8   : > { %v377_v26 = vsel %vm366_vm4, %v786_v25, 0.0 }
 0x1f9   : > { %378 = vadd.xlane.f32.xlu1 %v377_v26 }
 0x282   : > { %v379_v31 = vpop.xlane.xlu1 %378 }
 0x283   : > { %787 = vrcp.f32 %v379_v31 }
 0x290   : > { %v788_v32 = vpop.eup %787 }
 0x291   : > { %v381_v33 = vmul.f32 %v788_v32, %v786_v25 }
 0x293   : > { %v382_v35 = vpack.c.bf16 %v381_v33, %v381_v33  ;;  %550 = vst.msk [vmem:[%s259_s6] sm:$0xff] %vm366_vm4, %v381_v33 }
 0x295   : > { %729 = vmatmul.mubr.msk.bf16.vlgmr.msra.gmra.mxu1 %vm366_vm4, %v382_v35 }
 0x296   : > { %733 = vmatpush3.bf16.msra.mxu1 %v777_v34  ;;  %736 = vmatprep.mubr.msk.bf16.mxu1 %vm816_vm0, %v815_v0 }
 0x297   : > { %734 = vmatprep.subr.bf16.mxu1 %v815_v0 }
 0x29a   : > { %735 = vmatpush3.bf16.msra.mxu1 %v778_v36 }
 0x29d   : > { %737 = vmatmul.mubr.msk.bf16.vlgmr.msra.gmra.mxu1 %vm322_vm3, %v305_v12 }
 0x355   : > { %v425_v37 = vpop.f32.mrf.mxu1 }
 0x356   : > { %v431_v38 = vpack.c.bf16 %v425_v37, %v425_v37 }
 0x357   : > { %v730_v39 = vpop.f32.mrf.mxu1 }
 0x358   : > { %745 = vmatmul.mubr.msk.bf16.vlgmr.msra.gmra.mxu0 %vm322_vm3, %v431_v38 }
 0x359   : > { %v428_v40 = vpop.f32.mrf.mxu1 }
 0x35b   : > { %v731_v41 = vpop.f32.mrf.mxu1 }
 0x35d   : > { %v487_v42 = vpop.f32.mrf.mxu1 }
 0x35f   : > { %v738_v43 = vpop.f32.mrf.mxu1 }
 0x361   : > { %v490_v44 = vpop.f32.mrf.mxu1 }
 0x363   : > { %v739_v45 = vpop.f32.mrf.mxu1 }
 0x418   : > { %v542_v46 = vpop.f32.mrf.mxu0 }
 0x419   : > { %v543_v47 = vadd.f32 %v542_v46, %v487_v42 }
 0x41a   : > { %v746_v48 = vpop.f32.mrf.mxu0 }
 0x41b   : > { %789 = vtanh.f32 %v543_v47 }
 0x41c   : > { %v545_v49 = vpop.f32.mrf.mxu0 }
 0x41e   : > { %v747_v50 = vpop.f32.mrf.mxu0 }
 0x428   : > { %v790_v51 = vpop.eup %789 }
 0x429   : > { %549 = vst.msk [vmem:[%s252_s13] sm:$0xff] %vm322_vm3, %v790_v51 }
 0x42a PF: > { %s15_s17 = sadd.s32 1, %s813_s17   ;;  %s927_s15 = smov %s809_s16 }
 0x42b   : > { %p12_p5 = scmp.ge.s32.totalorder %s15_s17, 4   ;;  %s928_s16 = smov %s930_s18 }
 0x42d   :  { %14 = sbr.rel (!%p12_p5) target bundleno = 2 (0x2), region = 82 }

</bundles_post_ra>
